<compile_context>
chip_gen: v7x
topology: tpu7x:2x2x1
jax: 0.10.0
libtpu: 0.0.40
codegen_flags: <defaults>
</compile_context>

<pallas_src>
import functools
import math

import jax
import jax.numpy as jnp
from jax.experimental import pallas as pl
from jax.experimental.pallas import tpu as pltpu

HIDDEN = 32
NUM_INPUT = 3     # Pendulum-v1 observation space dim
NUM_ACTION = 1    # Pendulum-v1 action space dim
LANES = 128

# Parameter-slab row layout (f32[40, 128]; zero outside the live regions).
ROW_W1 = 0                    # rows 0..2 : fc1 weight (3, 32)   at [0:3, 0:32]
ROW_B1 = 3                    # row 3     : fc1 bias   (32,)     at [3, 0:32]
ROW_B2 = 4                    # row 4     : fc2 bias   (32,)     at [4, 0:32]
ROW_WM = 5                    # row 5     : mean weight (32,)    at [5, 0:32]
COL_BM = HIDDEN               #             mean bias (scalar)   at [5, 32]
COL_LOGSTD = HIDDEN + 1       #             log_std   (scalar)   at [5, 33]
ROW_W2 = 8                    # rows 8..39: fc2 weight (32, 32)  at [8:40, 0:32]
SLAB_ROWS = ROW_W2 + HIDDEN   # 40 (multiple of 8)

LOG_SQRT_2PI = float(0.5 * math.log(2.0 * math.pi))


def _policy_block(x0, x1, x2, eps, slab_ref):
    """Shared forward body.

    x0/x1/x2: scalar or (M,1) f32;  eps: (M,1) f32;  returns (M,128) f32 with
    action in lane 0 and log_prob in lane 1, zeros elsewhere.
    """
    # fc1: K=3 -> three broadcast FMAs on the VPU (lanes 32+ stay exactly 0).
    h1 = jnp.maximum(
        x0 * slab_ref[ROW_W1 + 0:ROW_W1 + 1, :]
        + x1 * slab_ref[ROW_W1 + 1:ROW_W1 + 2, :]
        + x2 * slab_ref[ROW_W1 + 2:ROW_W1 + 3, :]
        + slab_ref[ROW_B1:ROW_B1 + 1, :],
        0.0)                                                        # (M, 128)

    # fc2: (M,32) @ (32,128) on the MXU.  W2 columns >= 32 and b2 lanes >= 32
    # are zero, so h2 lanes >= 32 are exactly zero (required invariant).
    h2 = jnp.maximum(
        jnp.dot(h1[:, :HIDDEN],
                slab_ref[ROW_W2:ROW_W2 + HIDDEN, :],
                preferred_element_type=jnp.float32)
        + slab_ref[ROW_B2:ROW_B2 + 1, :],
        0.0)                                                        # (M, 128)

    # mean layer (N=1): elementwise mult + cross-lane reduce (XLU), no MXU.
    # wm row lanes 32/33 hold bm/log_std but h2 is zero there -> no leakage.
    mean_pre = jnp.sum(h2 * slab_ref[ROW_WM:ROW_WM + 1, :],
                       axis=-1, keepdims=True)                      # (M, 1)
    bm = slab_ref[ROW_WM:ROW_WM + 1, COL_BM:COL_BM + 1]             # (1, 1)
    log_std = slab_ref[ROW_WM:ROW_WM + 1, COL_LOGSTD:COL_LOGSTD + 1]

    mean = 2.0 * jnp.tanh(mean_pre + bm)                            # (M, 1)
    std = jnp.exp(log_std)                                          # (1, 1)

    action = mean + std * eps                 # Normal(mean, std).sample()
    # log_prob(action).sum(): (action - mean)/std == eps exactly -> analytic.
    logp = -0.5 * eps * eps - log_std - LOG_SQRT_2PI                # (M, 1)

    m = action.shape[0]
    lane = jax.lax.broadcasted_iota(jnp.int32, (m, LANES), 1)
    return jnp.where(lane == 0, action, jnp.where(lane == 1, logp, 0.0))


def reinforce_step_kernel(s_ref, slab_ref, out_ref):
    """Single env step. s_ref: SMEM f32[4] = [x0, x1, x2, eps]."""
    eps = s_ref[3] + jnp.zeros((1, 1), jnp.float32)
    out_ref[...] = _policy_block(s_ref[0], s_ref[1], s_ref[2], eps, slab_ref)


def reinforce_traj_kernel(data_ref, slab_ref, out_ref):
    """Batched trajectory block. data_ref: (TB, 8) = [x0, x1, x2, eps, 0...]."""
    x0 = data_ref[:, 0:1]
    x1 = data_ref[:, 1:2]
    x2 = data_ref[:, 2:3]
    eps = data_ref[:, 3:4]
    out_ref[...] = _policy_block(x0, x1, x2, eps, slab_ref)


def init_params(key):
    """Deterministic synthetic parameters matching ReinforceModel.__init__ shapes."""
    k1, k2, k3, k4, k5, k6 = jax.random.split(key, 6)
    scale = 0.1
    w1 = scale * jax.random.normal(k1, (NUM_INPUT, HIDDEN), jnp.float32)  # fc1.weight.T
    b1 = scale * jax.random.normal(k2, (HIDDEN,), jnp.float32)            # fc1.bias
    w2 = scale * jax.random.normal(k3, (HIDDEN, HIDDEN), jnp.float32)     # fc2.weight.T
    b2 = scale * jax.random.normal(k4, (HIDDEN,), jnp.float32)            # fc2.bias
    wm = scale * jax.random.normal(k5, (HIDDEN,), jnp.float32)            # mean_layer.weight row
    bm = scale * jax.random.normal(k6, (), jnp.float32)                   # mean_layer.bias
    log_std = jnp.zeros((), jnp.float32)   # nn.Parameter(torch.zeros(1, num_action))
    return w1, b1, w2, b2, wm, bm, log_std


def pack_params(w1, b1, w2, b2, wm, bm, log_std):
    """Pack all parameters into one aligned (40, 128) f32 slab.

    INVARIANT: everything outside the live regions must stay zero; in
    particular W2 rows/cols >= HIDDEN, b2 lanes >= HIDDEN and wm-row lanes
    >= HIDDEN+2 are zero so lanes 32..127 of h2 never leak into the mean
    reduce and the folded bm/log_std scalars stay inert.
    """
    slab = jnp.zeros((SLAB_ROWS, LANES), jnp.float32)
    slab = slab.at[ROW_W1:ROW_W1 + NUM_INPUT, :HIDDEN].set(w1)
    slab = slab.at[ROW_B1, :HIDDEN].set(b1)
    slab = slab.at[ROW_B2, :HIDDEN].set(b2)
    slab = slab.at[ROW_WM, :HIDDEN].set(wm)
    slab = slab.at[ROW_WM, COL_BM].set(jnp.asarray(bm, jnp.float32).reshape(()))
    slab = slab.at[ROW_WM, COL_LOGSTD].set(jnp.asarray(log_std, jnp.float32).reshape(()))
    slab = slab.at[ROW_W2:ROW_W2 + HIDDEN, :HIDDEN].set(w2)
    return slab


@jax.jit
def reinforce_forward(x, eps, slab):
    """Per-step API matching the torch forward(). x: (3,), eps: (1,1), slab: (40,128)."""
    scalars = jnp.concatenate([
        jnp.ravel(x).astype(jnp.float32),     # x0, x1, x2
        jnp.ravel(eps).astype(jnp.float32),   # standard-normal noise
    ])                                        # (4,) -> SMEM

    out = pl.pallas_call(
        reinforce_step_kernel,
        in_specs=[
            pl.BlockSpec(memory_space=pltpu.MemorySpace.SMEM),   # scalars
            pl.BlockSpec(memory_space=pltpu.MemorySpace.VMEM),   # parameter slab
        ],
        out_specs=pl.BlockSpec(memory_space=pltpu.MemorySpace.VMEM),
        out_shape=jax.ShapeDtypeStruct((1, LANES), jnp.float32),
    )(scalars, slab)

    action = out[0, 0:NUM_ACTION].reshape(1, NUM_ACTION)   # torch-shaped (1,1) action
    log_prob = out[0, 1]                                   # scalar, matches .sum()
    return action, log_prob


@functools.partial(jax.jit, static_argnames=("tb",))
def reinforce_forward_trajectory(obs, eps, slab, *, tb=32):
    """Batched trajectory forward: obs (T,3), eps (T,1) -> actions (T,1), log_probs (T,).

    One pallas_call for the whole trajectory; the weight slab is DMA'd once and
    stays resident across all grid steps (index_map returns (0,0) every step).
    """
    t = obs.shape[0]
    t_pad = pl.cdiv(t, tb) * tb

    data = jnp.zeros((t_pad, 8), jnp.float32)
    data = data.at[:t, 0:NUM_INPUT].set(obs.astype(jnp.float32))
    data = data.at[:t, 3].set(eps.reshape(t).astype(jnp.float32))

    out = pl.pallas_call(
        reinforce_traj_kernel,
        grid=(t_pad // tb,),
        in_specs=[
            pl.BlockSpec((tb, 8), lambda i: (i, 0)),              # per-step data
            pl.BlockSpec((SLAB_ROWS, LANES), lambda i: (0, 0)),   # slab, resident
        ],
        out_specs=pl.BlockSpec((tb, LANES), lambda i: (i, 0)),    # lane-dense out
        out_shape=jax.ShapeDtypeStruct((t_pad, LANES), jnp.float32),
        compiler_params=pltpu.CompilerParams(
            dimension_semantics=("parallel",)),   # shard trajectory across v7x's 2 TCs
    )(data, slab)

    actions = out[:t, 0:NUM_ACTION]   # (T, 1)
    log_probs = out[:t, 1]            # (T,)
    return actions, log_probs


if __name__ == "__main__":
    key = jax.random.PRNGKey(0)
    k_params, k_obs, k_eps = jax.random.split(key, 3)

    w1, b1, w2, b2, wm, bm, log_std = init_params(k_params)
    slab = pack_params(w1, b1, w2, b2, wm, bm, log_std)

    # Synthetic trajectory of Pendulum-v1 observations and pre-drawn N(0,1) noise.
    T = 64
    obs_traj = jax.random.normal(k_obs, (T, NUM_INPUT), jnp.float32)
    eps_traj = jax.random.normal(k_eps, (T, NUM_ACTION), jnp.float32)

    # Pure-JAX reference for a correctness cross-check.
    h1_r = jnp.maximum(obs_traj @ w1 + b1, 0.0)
    h2_r = jnp.maximum(h1_r @ w2 + b2, 0.0)
    mean_r = 2.0 * jnp.tanh(h2_r @ wm + bm)                       # (T,)
    std_r = jnp.exp(log_std)
    a_r = mean_r + std_r * eps_traj[:, 0]                         # (T,)
    lp_r = (-((a_r - mean_r) ** 2) / (2.0 * std_r * std_r)
            - log_std - LOG_SQRT_2PI)                             # (T,)

    # Batched trajectory path (the main perf lever).
    actions, log_probs = reinforce_forward_trajectory(obs_traj, eps_traj, slab, tb=32)
    jax.block_until_ready((actions, log_probs))
    assert actions.shape == (T, NUM_ACTION)
    assert log_probs.shape == (T,)
    assert jnp.allclose(actions[:, 0], a_r, atol=1e-4, rtol=1e-4)
    assert jnp.allclose(log_probs, lp_r, atol=1e-4, rtol=1e-4)

    # Per-step path (matches the torch module's forward() contract).
    action0, log_prob0 = reinforce_forward(obs_traj[0], eps_traj[0:1], slab)
    jax.block_until_ready((action0, log_prob0))
    assert action0.shape == (1, NUM_ACTION)
    assert log_prob0.shape == ()
    assert jnp.allclose(action0[0, 0], a_r[0], atol=1e-4, rtol=1e-4)
    assert jnp.allclose(log_prob0, lp_r[0], atol=1e-4, rtol=1e-4)

    print("KERNEL_OK")
</pallas_src>

<mosaic_0001>
module attributes {stable_mosaic.version = 11 : i64} {
  func.func @reinforce_traj_kernel(%arg0: i32, %arg1: memref<32x8xf32, #tpu.memory_space<vmem>>, %arg2: memref<40x128xf32, #tpu.memory_space<vmem>>, %arg3: memref<32x128xf32, #tpu.memory_space<vmem>>) attributes {dimension_semantics = [#tpu.dimension_semantics<parallel>], iteration_bounds = array<i64: 2>, scalar_prefetch = 0 : i64, scratch_operands = 0 : i64, tpu.core_type = #tpu.core_type<tc>, window_params = [{transform_indices = @transform_0, window_bounds = array<i64: 32, 8>}, {pipeline_mode = #tpu.pipeline_mode<synchronous>, transform_indices = @transform_1, window_bounds = array<i64: 40, 128>}, {transform_indices = @transform_2, window_bounds = array<i64: 32, 128>}]} {
    %c0 = arith.constant 0 : index
    %c0_0 = arith.constant 0 : index
    %0 = vector.load %arg1[%c0, %c0_0] : memref<32x8xf32, #tpu.memory_space<vmem>>, vector<32x1xf32>
    %c0_1 = arith.constant 0 : index
    %c1 = arith.constant 1 : index
    %1 = vector.load %arg1[%c0_1, %c1] : memref<32x8xf32, #tpu.memory_space<vmem>>, vector<32x1xf32>
    %c0_2 = arith.constant 0 : index
    %c2 = arith.constant 2 : index
    %2 = vector.load %arg1[%c0_2, %c2] : memref<32x8xf32, #tpu.memory_space<vmem>>, vector<32x1xf32>
    %c0_3 = arith.constant 0 : index
    %c3 = arith.constant 3 : index
    %3 = vector.load %arg1[%c0_3, %c3] : memref<32x8xf32, #tpu.memory_space<vmem>>, vector<32x1xf32>
    %c0_4 = arith.constant 0 : index
    %c0_5 = arith.constant 0 : index
    %4 = vector.load %arg2[%c0_4, %c0_5] : memref<40x128xf32, #tpu.memory_space<vmem>>, vector<1x128xf32>
    %5 = vector.broadcast %0 : vector<32x1xf32> to vector<32x128xf32>
    %6 = vector.broadcast %4 : vector<1x128xf32> to vector<32x128xf32>
    %7 = arith.mulf %5, %6 : vector<32x128xf32>
    %c1_6 = arith.constant 1 : index
    %c0_7 = arith.constant 0 : index
    %8 = vector.load %arg2[%c1_6, %c0_7] : memref<40x128xf32, #tpu.memory_space<vmem>>, vector<1x128xf32>
    %9 = vector.broadcast %1 : vector<32x1xf32> to vector<32x128xf32>
    %10 = vector.broadcast %8 : vector<1x128xf32> to vector<32x128xf32>
    %11 = arith.mulf %9, %10 : vector<32x128xf32>
    %12 = arith.addf %7, %11 : vector<32x128xf32>
    %c2_8 = arith.constant 2 : index
    %c0_9 = arith.constant 0 : index
    %13 = vector.load %arg2[%c2_8, %c0_9] : memref<40x128xf32, #tpu.memory_space<vmem>>, vector<1x128xf32>
    %14 = vector.broadcast %2 : vector<32x1xf32> to vector<32x128xf32>
    %15 = vector.broadcast %13 : vector<1x128xf32> to vector<32x128xf32>
    %16 = arith.mulf %14, %15 : vector<32x128xf32>
    %17 = arith.addf %12, %16 : vector<32x128xf32>
    %c3_10 = arith.constant 3 : index
    %c0_11 = arith.constant 0 : index
    %18 = vector.load %arg2[%c3_10, %c0_11] : memref<40x128xf32, #tpu.memory_space<vmem>>, vector<1x128xf32>
    %19 = vector.broadcast %18 : vector<1x128xf32> to vector<32x128xf32>
    %20 = arith.addf %17, %19 : vector<32x128xf32>
    %cst = arith.constant 0.000000e+00 : f32
    %21 = vector.broadcast %cst : f32 to vector<32x128xf32>
    %22 = arith.maximumf %20, %21 : vector<32x128xf32>
    %23 = vector.extract_strided_slice %22 {offsets = [0, 0], sizes = [32, 32], strides = [1, 1]} : vector<32x128xf32> to vector<32x32xf32>
    %c8 = arith.constant 8 : index
    %c0_12 = arith.constant 0 : index
    %24 = vector.load %arg2[%c8, %c0_12] : memref<40x128xf32, #tpu.memory_space<vmem>>, vector<32x128xf32>
    %cst_13 = arith.constant dense<0.000000e+00> : vector<32x128xf32>
    %25 = tpu.matmul %23, %24, %cst_13 {dimension_numbers = #tpu.dot_dimension_numbers<[1], [0], [0], [1], [0, 0, 1, 1], [], []>} : vector<32x32xf32>, vector<32x128xf32>, vector<32x128xf32> -> vector<32x128xf32>
    %c4 = arith.constant 4 : index
    %c0_14 = arith.constant 0 : index
    %26 = vector.load %arg2[%c4, %c0_14] : memref<40x128xf32, #tpu.memory_space<vmem>>, vector<1x128xf32>
    %27 = vector.broadcast %26 : vector<1x128xf32> to vector<32x128xf32>
    %28 = arith.addf %25, %27 : vector<32x128xf32>
    %cst_15 = arith.constant 0.000000e+00 : f32
    %29 = vector.broadcast %cst_15 : f32 to vector<32x128xf32>
    %30 = arith.maximumf %28, %29 : vector<32x128xf32>
    %c5 = arith.constant 5 : index
    %c0_16 = arith.constant 0 : index
    %31 = vector.load %arg2[%c5, %c0_16] : memref<40x128xf32, #tpu.memory_space<vmem>>, vector<1x128xf32>
    %32 = vector.broadcast %31 : vector<1x128xf32> to vector<32x128xf32>
    %33 = arith.mulf %30, %32 : vector<32x128xf32>
    %cst_17 = arith.constant dense<0.000000e+00> : vector<32xf32>
    %34 = vector.multi_reduction <add>, %33, %cst_17 [1] : vector<32x128xf32> to vector<32xf32>
    %35 = vector.shape_cast %34 : vector<32xf32> to vector<32x1xf32>
    %c5_18 = arith.constant 5 : index
    %c32 = arith.constant 32 : index
    %36 = vector.load %arg2[%c5_18, %c32] : memref<40x128xf32, #tpu.memory_space<vmem>>, vector<1x1xf32>
    %c5_19 = arith.constant 5 : index
    %c33 = arith.constant 33 : index
    %37 = vector.load %arg2[%c5_19, %c33] : memref<40x128xf32, #tpu.memory_space<vmem>>, vector<1x1xf32>
    %38 = vector.broadcast %36 : vector<1x1xf32> to vector<32x1xf32>
    %39 = arith.addf %35, %38 : vector<32x1xf32>
    %40 = math.tanh %39 : vector<32x1xf32>
    %cst_20 = arith.constant 2.000000e+00 : f32
    %41 = vector.broadcast %cst_20 : f32 to vector<32x1xf32>
    %42 = arith.mulf %41, %40 : vector<32x1xf32>
    %43 = math.exp %37 : vector<1x1xf32>
    %44 = vector.broadcast %43 : vector<1x1xf32> to vector<32x1xf32>
    %45 = arith.mulf %44, %3 : vector<32x1xf32>
    %46 = arith.addf %42, %45 : vector<32x1xf32>
    %cst_21 = arith.constant -5.000000e-01 : f32
    %47 = vector.broadcast %cst_21 : f32 to vector<32x1xf32>
    %48 = arith.mulf %47, %3 : vector<32x1xf32>
    %49 = arith.mulf %48, %3 : vector<32x1xf32>
    %50 = vector.broadcast %37 : vector<1x1xf32> to vector<32x1xf32>
    %51 = arith.subf %49, %50 : vector<32x1xf32>
    %cst_22 = arith.constant 0.918938517 : f32
    %52 = vector.broadcast %cst_22 : f32 to vector<32x1xf32>
    %53 = arith.subf %51, %52 : vector<32x1xf32>
    %54 = tpu.iota {dimensions = array<i32: 1>} : vector<32x128xi32>
    %c0_i32 = arith.constant 0 : i32
    %55 = vector.broadcast %c0_i32 : i32 to vector<32x128xi32>
    %56 = arith.cmpi eq, %54, %55 : vector<32x128xi32>
    %c1_i32 = arith.constant 1 : i32
    %57 = vector.broadcast %c1_i32 : i32 to vector<32x128xi32>
    %58 = arith.cmpi eq, %54, %57 : vector<32x128xi32>
    %cst_23 = arith.constant 0.000000e+00 : f32
    %59 = vector.shape_cast %53 : vector<32x1xf32> to vector<32x1xf32>
    %60 = vector.broadcast %59 : vector<32x1xf32> to vector<32x128xf32>
    %61 = vector.broadcast %cst_23 : f32 to vector<32x128xf32>
    %62 = arith.select %58, %60, %61 : vector<32x128xi1>, vector<32x128xf32>
    %63 = vector.shape_cast %46 : vector<32x1xf32> to vector<32x1xf32>
    %64 = vector.broadcast %63 : vector<32x1xf32> to vector<32x128xf32>
    %65 = arith.select %56, %64, %62 : vector<32x128xi1>, vector<32x128xf32>
    %c0_24 = arith.constant 0 : index
    %c0_25 = arith.constant 0 : index
    %66 = vector.load %arg3[%c0_24, %c0_25] : memref<32x128xf32, #tpu.memory_space<vmem>>, vector<32x128xf32>
    tpu.vector_store %arg3[%c0_24, %c0_25], %65 {strides = array<i32>} : memref<32x128xf32, #tpu.memory_space<vmem>>, vector<32x128xf32>,
    return
  }
  func.func @transform_0(%arg0: i32) -> (i32, i32) {
    %c0_i32 = arith.constant 0 : i32
    %c0_i32_0 = arith.constant 0 : i32
    return %arg0, %c0_i32 : i32, i32
  }
  func.func @transform_1(%arg0: i32) -> (i32, i32) {
    %c0_i32 = arith.constant 0 : i32
    %c0_i32_0 = arith.constant 0 : i32
    %c0_i32_1 = arith.constant 0 : i32
    return %c0_i32, %c0_i32_0 : i32, i32
  }
  func.func @transform_2(%arg0: i32) -> (i32, i32) {
    %c0_i32 = arith.constant 0 : i32
    %c0_i32_0 = arith.constant 0 : i32
    return %arg0, %c0_i32 : i32, i32
  }
}

</mosaic_0001>

<bundles_post_ra>
// kernel: reinforce_forward_trajectory.1
= control target key start
LH: loop header
LB: loop body
LE: loop exit
PB: predicated region body
PF: predicated region fallthrough
CT: control target
= control target key end

     0   :  { %s693_s9 = smov 0   ;;  %s806_s0 = inlined_call_operand.vmem [shape: f32[64,8], index: 0, kind: input, shape index: {}]   ;;  %s807_s1 = inlined_call_operand.vmem [shape: f32[40,128], index: 1, kind: input, shape index: {}]   ;;  %s808_s2 = inlined_call_operand.vmem [shape: f32[64,128], index: 2, kind: output, shape index: {}]  }
   0x1 LB: > { %s565_s10 = sadd.s32 4294967295, %s668_s9   ;;  %p569_p0 = scmp.ge.s32.totalorder %s668_s9, 1  ;;  %s668_s9 = sphi %s693_s9, %s12_s9  }
   0x2   : > { %p113_p1 = scmp.lt.s32.totalorder %s668_s9, 3 }
   0x4   : > { %p114_p2 = pnand %p569_p0, %p113_p1 }
   0x5   : > { %s570_s11 = sshll.u32 (!%p114_p2), %s565_s10, 2  ;;  %v670_v0 = vmov (!%p114_p2), 1   ;;  %v671_v1 = vmov (!%p114_p2), 0   ;;  %v672_v6 = vmov (!%p114_p2), 2   ;;  %v251_v7 = vld [vmem:[%s807_s1 + $0x8] sm:$0xff] (!%p114_p2)  ;;  %v252_v8 = vld [vmem:[%s807_s1 + $0x10] sm:$0xff] (!%p114_p2)  ;;  %v363_v14 = vlaneseq (!%p114_p2) }
   0x6   : > { %117 = sbr.rel (%p114_p2) target bundleno = 697 (0x2b9), region = 28  ;;  %639 = vset.pattern.permute.xlu0 (!%p114_p2), %v670_v0  ;;  %640 = vset.pattern.permute.xlu1 (!%p114_p2), %v671_v1  ;;  %p136_p3 = scmp.lt.s32.totalorder (!%p114_p2), %s570_s11, 7  ;;  %v611_v9 = vpack.c.bf16 (!%p114_p2), %v252_v8, %v251_v7  ;;  %v253_v10 = vld [vmem:[%s807_s1 + $0x18] sm:$0xff] (!%p114_p2)  ;;  %v254_v11 = vld [vmem:[%s807_s1 + $0x20] sm:$0xff] (!%p114_p2)  ;;  %vm260_vm0 = vcmask (!%p114_p2), 261120  }
   0x7   : > { %v615_v12 = vpack.c.bf16 (!%p114_p2), %v254_v11, %v253_v10  ;;  %v362_v13 = vld [vmem:[%s807_s1 + $0x5] sm:$0x1] (!%p114_p2)  ;;  %s673_s26 = smov (!%p114_p2), 30   ;;  %v364_v16 = vshrl.u32 (!%p114_p2), %v363_v14, 7  ;;  %s674_s27 = smov (!%p114_p2), 98  }
   0x8   : > { %612 = vmatprep.subr.bf16.mxu0 (!%p114_p2), %v611_v9  ;;  %619 = vmatprep.subr.bf16.mxu1 (!%p114_p2), %v611_v9  ;;  %v391_v15 = vmul.f32 (!%p114_p2), 1.442695, %v362_v13  ;;  %v574_v27 = vld [vmem:[%s807_s1] ss:$0 sm:$0xff] (!%p114_p2)  ;;  %v575_v28 = vld [vmem:[%s807_s1 + $0x1] ss:$0 sm:$0xff] (!%p114_p2) }
   0x9   : > { %614 = vmatpush3.bf16.msra.mxu0 (!%p114_p2), %v611_v9  ;;  %621 = vmatpush3.bf16.msra.mxu1 (!%p114_p2), %v611_v9  ;;  %v365_v17 = vsub.s32 (!%p114_p2), 0, %v364_v16  ;;  %v576_v32 = vld [vmem:[%s807_s1 + $0x2] ss:$0 sm:$0xff] (!%p114_p2)  ;;  %v577_v38 = vld [vmem:[%s807_s1 + $0x3] ss:$0 sm:$0xff] (!%p114_p2)  ;;  %s675_s8 = smov (!%p114_p2), 127  }
   0xa   : > { %616 = vmatprep.subr.bf16.mxu0 (!%p114_p2), %v615_v12  ;;  %620 = vmatprep.subr.bf16.mxu1 (!%p114_p2), %v615_v12  ;;  %652 = vpow2.f32 (!%p114_p2), %v391_v15  ;;  %v676_v9 = vmov (!%p114_p2), 3   ;;  %v578_v10 = vld [vmem:[%s807_s1 + $0x4] ss:$0 sm:$0xff] (!%p114_p2) }
   0xb   : > { %v749_v18 = vrot.slane (!%p114_p2), %v362_v13, %v365_v17 }
   0xd   : > { %s810_s11 = smov (!%p136_p3, %s570_s11), 7  ;;  %618 = vmatpush3.bf16.msra.mxu0 %v615_v12  ;;  %622 = vmatpush3.bf16.msra.mxu1 %v615_v12 }
   0xe   : > { %s571_s12 = sshll.u32 %s810_s11, 3 }
   0xf   : > { %s139_s15 = scalar_lea.vmem %s806_s0, %s571_s12  ;;  %s145_s16 = scalar_lea.vmem %s808_s2, %s571_s12 }
  0x10   : > { %v709_v2 = vld [vmem:[%s139_s15 + $0x8] sm:$0xff]  ;;  %v711_v3 = vld [vmem:[%s139_s15] sm:$0xff]  ;;  %v715_v4 = vld [vmem:[%s139_s15 + $0x10] sm:$0xff] }
  0x11   : > { %159 = vperm.xlu1 %640, %v709_v2   ;;  %182 = vperm.xlu0 %639, %v711_v3   ;;  %v721_v5 = vld [vmem:[%s139_s15 + $0x18] sm:$0xff] }
  0x14   : > { %v653_v19 = vpop.eup %652 }
  0x15   : > { %641 = vset.pattern.permute.xlu1 %v670_v0  ;;  %190 = vperm.xlu0 %639, %v715_v4   ;;  %v752_v20 = vrot.slane %v653_v19, %v365_v17 }
  0x16   : > { %186 = vperm.xlu1 %641, %v709_v2  }
  0x19   : > { %643 = vset.pattern.permute.xlu0 %v671_v1 }
  0x1a   : > { %642 = vset.pattern.permute.xlu1 %v671_v1  ;;  %154 = vperm.xlu0 %643, %v711_v3  }
  0x1b   : > { %164 = vperm.xlu1 %642, %v715_v4  }
  0x1e   : > { %169 = vperm.xlu0 %643, %v721_v5  }
  0x1f   : > { %644 = vset.pattern.permute.xlu1 %v672_v6 }
  0x20   : > { %211 = vperm.xlu1 %644, %v711_v3  }
  0x22   : > { %647 = vset.pattern.permute.xlu0 %v672_v6 }
  0x23   : > { %219 = vperm.xlu0 %647, %v715_v4  }
  0x24   : > { %645 = vset.pattern.permute.xlu1 %v670_v0 }
  0x25   : > { %194 = vperm.xlu1 %645, %v721_v5  }
  0x27   : > { %399 = vrot.lane.b32.xlu0 %v709_v2, %s673_s26 }
  0x28   : > { %648 = vset.pattern.permute.xlu0 %v676_v9 }
  0x29   : > { %646 = vset.pattern.permute.xlu1 %v672_v6 }
  0x2a   : > { %215 = vperm.xlu1 %646, %v709_v2  }
  0x2b   : > { %403 = vrot.lane.b32.xlu0 %v721_v5, %s673_s26 }
  0x2e   : > { %223 = vperm.xlu1 %646, %v721_v5  }
  0x2f   : > { %442 = vrot.lane.b32.xlu0 %v749_v18, %s674_s27 }
  0x32   : > { %397 = vrot.lane.b32.xlu1 %v711_v3, %s673_s26 }
  0x33   : > { %649 = vset.pattern.permute.xlu1 %v676_v9 }
  0x36   : > { %401 = vrot.lane.b32.xlu1 %v715_v4, %s673_s26 }
  0x90   : > { %v160_v21 = vpop.permute.xlu1 %159  ;;  %v183_v22 = vpop.permute.xlu0 %182 }
  0x91   : > { %v201_v29 = vmul.f32 %v575_v28, %v183_v22  ;;  %v177_v49 = vmul.f32 %v574_v27, %v160_v21 }
  0x94   : > { %v191_v23 = vpop.permute.xlu0 %190 }
  0x95   : > { %v187_v24 = vpop.permute.xlu1 %186  ;;  %v203_v33 = vmul.f32 %v575_v28, %v191_v23 }
  0x96   : > { %v202_v46 = vmul.f32 %v575_v28, %v187_v24 }
  0x98   : > { %v206_v52 = vadd.f32 %v202_v46, %v177_v49 }
  0x99   : > { %v155_v25 = vpop.permute.xlu0 %154 }
  0x9a   : > { %v165_v26 = vpop.permute.xlu1 %164  ;;  %v176_v30 = vmul.f32 %v574_v27, %v155_v25 }
  0x9b   : > { %v178_v34 = vmul.f32 %v574_v27, %v165_v26 }
  0x9c   : > { %v205_v36 = vadd.f32 %v201_v29, %v176_v30  ;;  %v434_v30 = vmul.f32 -0.5, %v709_v2 }
  0x9d   : > { %v170_v31 = vpop.permute.xlu0 %169  ;;  %v207_v41 = vadd.f32 %v203_v33, %v178_v34 }
  0x9e   : > { %v179_v53 = vmul.f32 %v574_v27, %v170_v31  ;;  %v433_v31 = vmul.f32 -0.5, %v711_v3  ;;  %v438_v33 = vmul.f32 %v434_v30, %v709_v2 }
  0x9f   : > { %v212_v35 = vpop.permute.xlu1 %211 }
  0xa0   : > { %v230_v37 = vmul.f32 %v576_v32, %v212_v35  ;;  %v437_v34 = vmul.f32 %v433_v31, %v711_v3  ;;  %v435_v35 = vmul.f32 -0.5, %v715_v4 }
  0xa2   : > { %v234_v39 = vadd.f32 %v230_v37, %v205_v36  ;;  %v220_v40 = vpop.permute.xlu0 %219 }
  0xa3   : > { %v232_v42 = vmul.f32 %v576_v32, %v220_v40 }
  0xa4   : > { %v195_v43 = vpop.permute.xlu1 %194  ;;  %v243_v44 = vadd.f32 %v577_v38, %v234_v39 }
  0xa5   : > { %v236_v45 = vadd.f32 %v232_v42, %v207_v41  ;;  %v204_v54 = vmul.f32 %v575_v28, %v195_v43  ;;  %v439_v42 = vmul.f32 %v435_v35, %v715_v4  ;;  %v436_v43 = vmul.f32 -0.5, %v721_v5 }
  0xa6   : > { %v247_v47 = vmax.f32 %v243_v44, 0.0  ;;  %v400_v0 = vpop.permute.xlu0 %399 }
  0xa7   : > { %v245_v48 = vadd.f32 %v577_v38, %v236_v45  ;;  %v208_v58 = vadd.f32 %v204_v54, %v179_v53  ;;  %v410_v8 = vmul.f32 %v400_v0, %v752_v20  ;;  %v440_v45 = vmul.f32 %v436_v43, %v721_v5 }
  0xa8   : > { %605 = vmatprep.mubr.msk.f32.mxu0 %vm260_vm0, %v247_v47 }
  0xa9   : > { %v216_v50 = vpop.permute.xlu1 %215  ;;  %v249_v51 = vmax.f32 %v245_v48, 0.0  ;;  %v677_v48 = vmov 32  }
  0xaa   : > { %v231_v55 = vmul.f32 %v576_v32, %v216_v50 }
  0xab   : > { %608 = vmatprep.mubr.msk.f32.mxu1 %vm260_vm0, %v249_v51 }
  0xac   : > { %v235_v56 = vadd.f32 %v231_v55, %v206_v52 }
  0xad   : > { %v224_v57 = vpop.permute.xlu1 %223 }
  0xae   : > { %v244_v59 = vadd.f32 %v577_v38, %v235_v56  ;;  %v233_v60 = vmul.f32 %v576_v32, %v224_v57  ;;  %v404_v32 = vpop.permute.xlu0 %403 }
  0xb0   : > { %v248_v61 = vmax.f32 %v244_v59, 0.0  ;;  %v237_v62 = vadd.f32 %v233_v60, %v208_v58 }
  0xb1   : > { %v398_v63 = vpop.permute.xlu1 %397 }
  0xb2   : > { %v246_v1 = vadd.f32 %v577_v38, %v237_v62  ;;  %606 = vmatmul.mubr.msk.f32.vlgmr.msra.gmra.mrb[0].mxu0 %vm260_vm0, %v248_v61  ;;  %v409_v6 = vmul.f32 %v398_v63, %v752_v20  ;;  %v443_v37 = vpop.permute.xlu0 %442  ;;  %v412_v38 = vmul.f32 %v404_v32, %v752_v20 }
  0xb3   : > { %v446_v39 = vsub.f32 %v438_v33, %v443_v37  ;;  %v445_v41 = vsub.f32 %v437_v34, %v443_v37  ;;  %v447_v3 = vsub.f32 %v439_v42, %v443_v37  ;;  %v448_v47 = vsub.f32 %v440_v45, %v443_v37 }
  0xb4   : > { %v250_v7 = vmax.f32 %v246_v1, 0.0  ;;  %417 = vrot.lane.b32.xlu1 %v409_v6, %s675_s8 }
  0xb5   : > { %v402_v36 = vpop.permute.xlu1 %401  ;;  %v584_v44 = vadd.f32 -0.9189385, %v446_v39  ;;  %v583_v2 = vadd.f32 -0.9189385, %v445_v41  ;;  %v585_v46 = vadd.f32 -0.9189385, %v447_v3 }
  0xb6   : > { %609 = vmatmul.mubr.msk.f32.vlgmr.msra.gmra.mrb[0].mxu1 %vm260_vm0, %v250_v7  ;;  %v411_v40 = vmul.f32 %v402_v36, %v752_v20  ;;  %v586_v20 = vadd.f32 -0.9189385, %v448_v47 }
  0xb8   : > { %419 = vrot.lane.b32.xlu1 %v410_v8, %s675_s8 }
 0x126   : > { %v418_v4 = vpop.permute.xlu1 %417 }
 0x12a   : > { %v420_v49 = vpop.permute.xlu1 %419 }
 0x185   : > { %v607_v11 = vpop.f32.mrb[0].mxu0 }
 0x186   : > { %v345_v12 = vadd.f32 %v607_v11, %v578_v10  ;;  %v339_v13 = vpop.f32.mrb[1].mxu0 }
 0x187   : > { %v340_v17 = vadd.f32 %v578_v10, %v339_v13 }
 0x188   : > { %v359_v15 = vmax.f32 %v345_v12, 0.0  ;;  %v454_v12 = vand.u32 127, %v363_v14 }
 0x189   : > { %v610_v16 = vpop.f32.mrb[0].mxu1  ;;  %v358_v26 = vmax.f32 %v340_v17, 0.0 }
 0x18a   : > { %v355_v19 = vadd.f32 %v610_v16, %v578_v10  ;;  %v349_v21 = vpop.f32.mrb[1].mxu1  ;;  %v368_v22 = vmul.f32 %v749_v18, %v359_v15  ;;  %vm456_vm1 = vcmp.eq.s32.totalorder %v454_v12, 1  ;;  %vm455_vm2 = vcmp.eq.s32.totalorder %v454_v12, 0 }
 0x18b   : > { %v350_v23 = vadd.f32 %v578_v10, %v349_v21  ;;  %v367_v29 = vmul.f32 %v749_v18, %v358_v26 }
 0x18c   : > { %v361_v24 = vmax.f32 %v355_v19, 0.0  ;;  %373 = vadd.xlane.f32.xlu0 %v368_v22 }
 0x18d   : > { %v360_v25 = vmax.f32 %v350_v23, 0.0 }
 0x18e   : > { %v370_v27 = vmul.f32 %v749_v18, %v361_v24 }
 0x18f   : > { %v369_v28 = vmul.f32 %v749_v18, %v360_v25 }
 0x190   : > { %377 = vadd.xlane.f32.xlu1 %v370_v27 }
 0x191   : > { %375 = vadd.xlane.f32.xlu0 %v369_v28 }
 0x194   : > { %371 = vadd.xlane.f32.xlu1 %v367_v29 }
 0x1a5   : > { %423 = vrot.lane.b32.xlu1 %v412_v38, %s675_s8 }
 0x1a7   : > { %421 = vrot.lane.b32.xlu0 %v411_v40, %s675_s8 }
 0x1a9   : > { %464 = vperm.xlu1 %649, %v584_v44  }
 0x1ab   : > { %459 = vperm.xlu0 %648, %v583_v2  }
 0x1ad   : > { %650 = vset.pattern.permute.xlu1 %v677_v48 }
 0x1af   : > { %469 = vperm.xlu0 %648, %v585_v46  }
 0x1b3   : > { %474 = vperm.xlu0 %648, %v586_v20  }
 0x1b7   : > { %651 = vset.pattern.permute.xlu0 %v677_v48 }
 0x219   : > { %v374_v50 = vpop.xlane.xlu0 %373 }
 0x21a   : > { %v380_v51 = vadd.f32 %v374_v50, %v749_v18 }
 0x21c   : > { %654 = vtanh.f32 %v380_v51 }
 0x21d   : > { %v378_v52 = vpop.xlane.xlu1 %377 }
 0x21e   : > { %v382_v53 = vadd.f32 %v378_v52, %v749_v18  ;;  %v376_v5 = vpop.xlane.xlu0 %375 }
 0x21f   : > { %v381_v54 = vadd.f32 %v376_v5, %v749_v18 }
 0x220   : > { %656 = vtanh.f32 %v382_v53 }
 0x221   : > { %v372_v55 = vpop.xlane.xlu1 %371  ;;  %658 = vtanh.f32 %v381_v54 }
 0x222   : > { %v379_v56 = vadd.f32 %v372_v55, %v749_v18  ;;  %v422_v9 = vpop.permute.xlu0 %421 }
 0x224   : > { %660 = vtanh.f32 %v379_v56 }
 0x225   : > { %v424_v61 = vpop.permute.xlu1 %423 }
 0x226   : > { %v655_v57 = vpop.eup %654 }
 0x227   : > { %v388_v58 = vmul.f32 2.0, %v655_v57 }
 0x229   : > { %v430_v59 = vadd.f32 %v420_v49, %v388_v58  ;;  %v465_v11 = vpop.permute.xlu1 %464 }
 0x22a   : > { %v657_v60 = vpop.eup %656  ;;  %v460_v10 = vpop.permute.xlu0 %459  ;;  %v478_v21 = vsel %vm456_vm1, %v465_v11, 0.0 }
 0x22b   : > { %488 = vperm.xlu1 %650, %v430_v59   ;;  %v390_v62 = vmul.f32 2.0, %v657_v60  ;;  %v659_v63 = vpop.eup %658  ;;  %v477_v17 = vsel %vm456_vm1, %v460_v10, 0.0 }
 0x22c   : > { %v389_v7 = vmul.f32 2.0, %v659_v63 }
 0x22d   : > { %v432_v0 = vadd.f32 %v424_v61, %v390_v62 }
 0x22e   : > { %v661_v1 = vpop.eup %660  ;;  %v431_v18 = vadd.f32 %v422_v9, %v389_v7  ;;  %v470_v13 = vpop.permute.xlu0 %469 }
 0x22f   : > { %v387_v6 = vmul.f32 2.0, %v661_v1  ;;  %498 = vperm.xlu0 %651, %v432_v0   ;;  %v479_v25 = vsel %vm456_vm1, %v470_v13, 0.0 }
 0x231   : > { %v429_v8 = vadd.f32 %v418_v4, %v387_v6 }
 0x232   : > { %v475_v16 = vpop.permute.xlu0 %474 }
 0x233   : > { %483 = vperm.xlu1 %650, %v429_v8   ;;  %v480_v26 = vsel %vm456_vm1, %v475_v16, 0.0 }
 0x237   : > { %493 = vperm.xlu1 %650, %v431_v18  }
 0x2aa   : > { %v489_v15 = vpop.permute.xlu1 %488 }
 0x2ab   : > { %v502_v23 = vsel %vm455_vm2, %v489_v15, %v478_v21 }
 0x2ac   : > { %506 = vst [vmem:[%s145_s16 + $0x8] sm:$0xff] %v502_v23 }
 0x2ae   : > { %v499_v24 = vpop.permute.xlu0 %498 }
 0x2af   : > { %v504_v28 = vsel %vm455_vm2, %v499_v24, %v480_v26 }
 0x2b0   : > { %508 = vst [vmem:[%s145_s16 + $0x18] sm:$0xff] %v504_v28 }
 0x2b2   : > { %v484_v19 = vpop.permute.xlu1 %483 }
 0x2b3   : > { %v501_v22 = vsel %vm455_vm2, %v484_v19, %v477_v17 }
 0x2b4   : > { %505 = vst [vmem:[%s145_s16] sm:$0xff] %v501_v22 }
 0x2b6   : > { %v494_v14 = vpop.permute.xlu1 %493 }
 0x2b7   : > { %v503_v27 = vsel %vm455_vm2, %v494_v14, %v479_v25 }
 0x2b8   : > { %507 = vst [vmem:[%s145_s16 + $0x10] sm:$0xff] %v503_v27 }
 0x2b9 PF: > { %s12_s9 = sadd.s32 1, %s668_s9  }
 0x2ba   : > { %p9_p4 = scmp.ge.s32.totalorder %s12_s9, 4  }
 0x2bc   :  { %11 = sbr.rel (!%p9_p4) target bundleno = 1 (0x1), region = 58 }

</bundles_post_ra>
